<compile_context>
chip_gen: v7x
topology: tpu7x:2x2x1
jax: 0.10.0
libtpu: 0.0.40
codegen_flags: <defaults>
</compile_context>

<pallas_src>
import jax
import jax.numpy as jnp
from jax.experimental import pallas as pl
from jax.experimental.pallas import tpu as pltpu


# ---------------------------------------------------------------------------
# Kernel
# ---------------------------------------------------------------------------
def _make_nconv_kernel(num_supports):
    def kernel(at_ref, x_ref, o_ref):
        # at_ref: (S, W, V)  resident stack of transposed adjacency supports
        # x_ref : (V, TL)    one lane tile of x laid out as (V, B*L)
        # o_ref : (S, W, TL) matching lane tile of all S outputs
        x_tile = x_ref[...]  # load once, reuse for every support
        for s in range(num_supports):  # S is small (1..~8): static unroll
            o_ref[s] = jnp.dot(
                at_ref[s], x_tile, preferred_element_type=jnp.float32
            ).astype(o_ref.dtype)

    return kernel


# ---------------------------------------------------------------------------
# Tiling helpers
# ---------------------------------------------------------------------------
def _resolve_lane_tile(lane_tile, bl, v, w, s, itemsize,
                       budget_bytes=20 * 1024 * 1024):
    """Pick / validate the 128-aligned lane tile.

    Auto mode: largest tile whose double-buffered (x + S outputs) blocks fit
    under `budget_bytes`, capped so there are >=2 tiles for large B*L (lets a
    2-TensorCore part shard the parallel axis) and nudged so the remainder
    tile is either empty or at least half a tile (avoids a mostly-padding
    masked MXU pass + masked stores).
    """
    if lane_tile is not None:
        if lane_tile >= bl or bl <= 128:
            return bl  # full extent is always a legal block shape
        # round a user-supplied tile to a multiple of 128 (lowering footgun)
        return max(128, (int(lane_tile) // 128) * 128)

    if bl <= 1024:
        return bl  # single tile; per-step overhead would dominate otherwise

    per_lane = 2 * (v + s * w) * itemsize          # double-buffered in + out
    tl = int(budget_bytes // per_lane)
    tl = max(128, (tl // 128) * 128)
    max_tl = ((bl + 255) // 256) * 128             # keep at least 2 tiles
    tl = min(tl, max_tl)
    while tl > 128 and 0 < bl % tl < tl // 2:      # avoid tiny remainder tile
        tl -= 128
    return tl


def _vmem_limit_bytes(at_bytes, x_tile_bytes, o_tile_bytes):
    """Scoped-VMEM limit: what the pipeline needs (double-buffered) plus
    headroom, capped at 48 MiB (safe on v5e/v6e 128 MiB and v7x 64 MiB)."""
    need = 2 * at_bytes + 2 * (x_tile_bytes + o_tile_bytes)
    return int(min(48 * 1024 * 1024, max(32 * 1024 * 1024, 2 * need)))


# ---------------------------------------------------------------------------
# Core graph-major implementation (no wrapper HBM permutes)
# ---------------------------------------------------------------------------
def nconv_graph_major(x2d, A, *, lane_tile=None, compute_dtype=None):
    """Graph-major nconv: x2d is (V, B*L); A is (V, W) or (S, V, W).

    Returns (W, B*L) or (S, W, B*L) with no layout permutes -- use this
    across a chain of nconv calls and permute once per layer stack.
    """
    squeeze = (A.ndim == 2)
    A_stack = A[None] if squeeze else A            # (S, V, W)
    At = jnp.swapaxes(A_stack, -1, -2)             # (S, W, V) -- tiny
    V, BL = x2d.shape
    S, W, V2 = At.shape
    assert V == V2, "node dimension mismatch between x and A"

    out_dtype = x2d.dtype
    # bf16-first when inputs are already bf16; opt-in for f32 callers.
    if compute_dtype is None and x2d.dtype == jnp.bfloat16:
        compute_dtype = jnp.bfloat16
    if compute_dtype is not None:
        x2d = x2d.astype(compute_dtype)
        At = At.astype(compute_dtype)

    in_itemsize = jnp.dtype(x2d.dtype).itemsize
    out_itemsize = jnp.dtype(out_dtype).itemsize

    tl = _resolve_lane_tile(lane_tile, BL, V, W, S, in_itemsize)
    num_tiles = pl.cdiv(BL, tl)   # partial last tile lanes are masked on store

    at_bytes = S * W * V * in_itemsize
    x_tile_bytes = V * tl * in_itemsize
    o_tile_bytes = S * W * tl * out_itemsize

    cost = pl.CostEstimate(
        flops=2 * S * V * W * BL,
        transcendentals=0,
        bytes_accessed=in_itemsize * (BL * V + S * V * W)
        + out_itemsize * S * W * BL,
    )

    out2d = pl.pallas_call(
        _make_nconv_kernel(S),
        out_shape=jax.ShapeDtypeStruct((S, W, BL), out_dtype),
        grid_spec=pltpu.PrefetchScalarGridSpec(
            num_scalar_prefetch=0,
            grid=(num_tiles,),
            in_specs=[
                # A^T stack: tiny, fully resident across all lane tiles.
                pl.BlockSpec((S, W, V), lambda i: (0, 0, 0)),
                # x2d: one lane tile per grid step, reused for all S supports.
                pl.BlockSpec((V, tl), lambda i: (0, i)),
            ],
            out_specs=pl.BlockSpec((S, W, tl), lambda i: (0, 0, i)),
        ),
        compiler_params=pltpu.CompilerParams(
            # lane axis is independent -> shardable across TensorCores (v7x)
            dimension_semantics=("parallel",),
            vmem_limit_bytes=_vmem_limit_bytes(
                at_bytes, x_tile_bytes, o_tile_bytes
            ),
        ),
        cost_estimate=cost,
    )(At, x2d)

    return out2d[0] if squeeze else out2d


# ---------------------------------------------------------------------------
# PyTorch-layout wrappers
# ---------------------------------------------------------------------------
def nconv_multi(x, A_stack, *, lane_tile=None, compute_dtype=None):
    """Batched nconv over S adjacency supports.

    x: (N, C, V, L), A_stack: (S, V, W) -> (S, N, C, W, L).
    The input permute + every x HBM read is amortized over the S supports.
    """
    N, C, V, L = x.shape
    S, V2, W = A_stack.shape
    assert V == V2, "node dimension mismatch between x and A"
    B = N * C

    # Layout plumbing at the module boundary only (see nconv_graph_major to
    # elide it across chained calls).
    x2d = jnp.transpose(x.reshape(B, V, L), (1, 0, 2)).reshape(V, B * L)
    out2d = nconv_graph_major(
        x2d, A_stack, lane_tile=lane_tile, compute_dtype=compute_dtype
    )  # (S, W, B*L)
    out = jnp.transpose(out2d.reshape(S, W, B, L), (0, 2, 1, 3))  # (S,B,W,L)
    return out.reshape(S, N, C, W, L)


def nconv(x, A, *, lane_tile=None, compute_dtype=None):
    """Pallas TPU implementation of torch.einsum('ncvl,vw->ncwl', (x, A)).

    x: (N, C, V, L), A: (V, W) -> (N, C, W, L), same dtype as x.
    """
    return nconv_multi(
        x, A[None], lane_tile=lane_tile, compute_dtype=compute_dtype
    )[0]


# ---------------------------------------------------------------------------
# Self-test
# ---------------------------------------------------------------------------
if __name__ == "__main__":
    key = jax.random.PRNGKey(0)
    k0, k1, k2, k3, k4 = jax.random.split(key, 5)

    # Case 1: exact PyTorch nconv semantics, single support, single lane tile.
    N, C, V, L = 2, 4, 16, 16
    x = jax.random.normal(k0, (N, C, V, L), dtype=jnp.float32)
    A = jax.random.normal(k1, (V, V), dtype=jnp.float32)
    out = jax.block_until_ready(nconv(x, A))
    ref = jnp.einsum("ncvl,vw->ncwl", x, A)
    assert out.shape == (N, C, V, L)
    assert jnp.allclose(out, ref, atol=1e-4, rtol=1e-4)

    # Case 2: multi-support batching — S supports share every x lane-tile DMA.
    S = 3
    A_stack = jax.random.normal(k2, (S, V, V), dtype=jnp.float32)
    outs = jax.block_until_ready(nconv_multi(x, A_stack))
    refs = jnp.einsum("ncvl,svw->sncwl", x, A_stack)
    assert outs.shape == (S, N, C, V, L)
    assert jnp.allclose(outs, refs, atol=1e-4, rtol=1e-4)

    # Case 3: multi-tile grid with a masked partial last lane tile, plus a
    # user lane_tile (130) that gets rounded down to a legal 128.
    N2, C2, V2, L2 = 2, 8, 24, 20            # B*L = 320 -> 3 tiles of 128
    x2 = jax.random.normal(k3, (N2, C2, V2, L2), dtype=jnp.float32)
    A2 = jax.random.normal(k4, (V2, V2), dtype=jnp.float32)
    out2 = jax.block_until_ready(nconv(x2, A2, lane_tile=130))
    ref2 = jnp.einsum("ncvl,vw->ncwl", x2, A2)
    assert out2.shape == (N2, C2, V2, L2)
    assert jnp.allclose(out2, ref2, atol=1e-4, rtol=1e-4)

    # Case 4: bf16 inputs auto-select bf16 compute (f32 MXU accumulation).
    xb = x.astype(jnp.bfloat16)
    Ab = A.astype(jnp.bfloat16)
    outb = jax.block_until_ready(nconv(xb, Ab))
    refb = jnp.einsum(
        "ncvl,vw->ncwl", xb.astype(jnp.float32), Ab.astype(jnp.float32)
    )
    assert outb.dtype == jnp.bfloat16
    assert jnp.allclose(outb.astype(jnp.float32), refb, atol=0.1, rtol=0.05)

    print("KERNEL_OK")
</pallas_src>

<mosaic_0001>
module attributes {stable_mosaic.version = 11 : i64} {
  func.func @kernel(%arg0: i32, %arg1: memref<1x16x16xf32, #tpu.memory_space<vmem>>, %arg2: memref<16x128xf32, #tpu.memory_space<vmem>>, %arg3: memref<1x16x128xf32, #tpu.memory_space<vmem>>) attributes {dimension_semantics = [#tpu.dimension_semantics<parallel>], iteration_bounds = array<i64: 1>, scalar_prefetch = 0 : i64, scratch_operands = 0 : i64, tpu.core_type = #tpu.core_type<tc>, window_params = [{pipeline_mode = #tpu.pipeline_mode<synchronous>, transform_indices = @transform_0, window_bounds = array<i64: 1, 16, 16>}, {transform_indices = @transform_1, window_bounds = array<i64: 16, 128>}, {transform_indices = @transform_2, window_bounds = array<i64: 1, 16, 128>}]} {
    %c0 = arith.constant 0 : index
    %c0_0 = arith.constant 0 : index
    %0 = vector.load %arg2[%c0, %c0_0] : memref<16x128xf32, #tpu.memory_space<vmem>>, vector<16x128xf32>
    %c0_1 = arith.constant 0 : index
    %c0_2 = arith.constant 0 : index
    %c0_3 = arith.constant 0 : index
    %1 = vector.load %arg1[%c0_1, %c0_2, %c0_3] : memref<1x16x16xf32, #tpu.memory_space<vmem>>, vector<1x16x16xf32>
    %2 = vector.shape_cast %1 : vector<1x16x16xf32> to vector<16x16xf32>
    %cst = arith.constant dense<0.000000e+00> : vector<16x128xf32>
    %3 = tpu.matmul %2, %0, %cst {dimension_numbers = #tpu.dot_dimension_numbers<[1], [0], [0], [1], [0, 0, 1, 1], [], []>} : vector<16x16xf32>, vector<16x128xf32>, vector<16x128xf32> -> vector<16x128xf32>
    %c0_4 = arith.constant 0 : index
    %c0_5 = arith.constant 0 : index
    %c0_6 = arith.constant 0 : index
    %4 = vector.load %arg3[%c0_4, %c0_5, %c0_6] : memref<1x16x128xf32, #tpu.memory_space<vmem>>, vector<1x16x128xf32>
    %5 = vector.shape_cast %4 : vector<1x16x128xf32> to vector<16x128xf32>
    %6 = vector.shape_cast %3 : vector<16x128xf32> to vector<1x16x128xf32>
    tpu.vector_store %arg3[%c0_4, %c0_5, %c0_6], %6 {strides = array<i32>} : memref<1x16x128xf32, #tpu.memory_space<vmem>>, vector<1x16x128xf32>,
    return
  }
  func.func @transform_0(%arg0: i32) -> (i32, i32, i32) {
    %c0_i32 = arith.constant 0 : i32
    %c0_i32_0 = arith.constant 0 : i32
    %c0_i32_1 = arith.constant 0 : i32
    %c0_i32_2 = arith.constant 0 : i32
    return %c0_i32, %c0_i32_0, %c0_i32_1 : i32, i32, i32
  }
  func.func @transform_1(%arg0: i32) -> (i32, i32) {
    %c0_i32 = arith.constant 0 : i32
    %c0_i32_0 = arith.constant 0 : i32
    return %c0_i32, %arg0 : i32, i32
  }
  func.func @transform_2(%arg0: i32) -> (i32, i32, i32) {
    %c0_i32 = arith.constant 0 : i32
    %c0_i32_0 = arith.constant 0 : i32
    %c0_i32_1 = arith.constant 0 : i32
    return %c0_i32, %c0_i32_0, %arg0 : i32, i32, i32
  }
}

</mosaic_0001>

<bundles_post_ra>
// kernel: tpu_custom_call.1
= control target key start
LH: loop header
LB: loop body
LE: loop exit
PB: predicated region body
PF: predicated region fallthrough
CT: control target
= control target key end

     0   :  { %7 = vsyncpa [#allocation3], 0  ;;  %s305_s0 = inlined_call_operand.hbm [shape: f32[1,16,16], index: 0, kind: input, shape index: {}]   ;;  %s306_s1 = inlined_call_operand.hbm [shape: f32[16,128], index: 1, kind: input, shape index: {}]   ;;  %s307_s2 = inlined_call_operand.hbm [shape: f32[1,16,128], index: 2, kind: output, shape index: {}]  }
   0x1   :  { %8 = vsyncpa [#allocation6], 0 }
   0x2   :  { %9 = vsyncpa [#allocation4], 0  ;;  %s240_s9 = smov [#allocation2]   ;;  %s168_s13 = scalar_lea.hbm %s305_s0, 256 }
   0x3   :  { %s15_s10 = sshll.u32 %s240_s9, 4  ;;  %p169_p0 = scmp.ne.s32.totalorder %s305_s0, %s168_s13  ;;  %s16_s10 = int_to_ptr.vmem [resolvable:$true] %s15_s10 }
   0x4   :  { %p172_p1 = scmp.lt.u32.totalorder %s168_s13, %s305_s0 }
   0x6   :  { %p174_p2 = pnand %p172_p1, %p169_p0 }
   0x8   :  { %177 = shalt.err (!%p174_p2)
}
   0x9   :  { %s178_s18 = scalar_lea.vmem %s16_s10, 256  ;;  %p183_p4 = scmp.lt.s32.totalorder %s16_s10, %s16_s10 }
   0xa   :  { %p179_p3 = scmp.ne.s32.totalorder %s16_s10, %s178_s18  ;;  %p184_p5 = scmp.lt.s32.totalorder %s178_s18, %s178_s18 }
   0xc   :  { %p185_p6 = por %p184_p5, %p183_p4 }
   0xe   :  { %p186_p7 = pnand %p185_p6, %p179_p3 }
  0x10   :  { %189 = shalt.err (!%p186_p7)
}
  0x11   :  { %s241_s19 = smov 128   ;;  %s242_s20 = smov 8  }
  0x12   :  { %21 = dma.hbm_to_vmem [thread:$0]  %s305_s0, 256, %s16_s10, [#allocation3], %s241_s19, %s241_s19, %s242_s20  }
  0x13   :  { %s243_s23 = smov [#allocation5]   ;;  %s190_s27 = scalar_lea.hbm %s306_s1, 256 }
  0x14   :  { %s27_s24 = sshll.u32 %s243_s23, 4  ;;  %p191_p8 = scmp.ne.s32.totalorder %s306_s1, %s190_s27  ;;  %s28_s24 = int_to_ptr.vmem [resolvable:$true] %s27_s24 }
  0x15   :  { %p194_p9 = scmp.lt.u32.totalorder %s190_s27, %s306_s1 }
  0x17   :  { %p196_p10 = pnand %p194_p9, %p191_p8 }
  0x19   :  { %199 = shalt.err (!%p196_p10)
}
  0x1a   :  { %s200_s4 = scalar_lea.vmem %s28_s24, 256  ;;  %p205_p12 = scmp.lt.s32.totalorder %s28_s24, %s28_s24 }
  0x1b   :  { %p201_p11 = scmp.ne.s32.totalorder %s28_s24, %s200_s4  ;;  %p206_p13 = scmp.lt.s32.totalorder %s200_s4, %s200_s4 }
  0x1d   :  { %p207_p0 = por %p206_p13, %p205_p12 }
  0x1f   :  { %p208_p1 = pnand %p207_p0, %p201_p11 }
  0x21   :  { %211 = shalt.err (!%p208_p1)
}
  0x22   :  { %33 = dma.hbm_to_vmem [thread:$0]  %s306_s1, 256, %s28_s24, [#allocation6], %s241_s19, %s241_s19, %s242_s20  }
  0x23   :  { %234 = dma.done.wait [#allocation3], 256  }
  0x24   :  { %235 = vsyncadd [#allocation3], 4294967040 }
  0x25   :  { %236 = dma.done.wait [#allocation6], 256  }
  0x26   :  { %237 = vsyncadd [#allocation6], 4294967040  ;;  %vm44_vm0 = vcmask 130048   ;;  %v40_v0 = vld [vmem:[#allocation5] sm:$0xff]  ;;  %v41_v1 = vld [vmem:[#allocation5 + $0x8] sm:$0xff]  ;;  %s244_s6 = smov [#allocation7]  }
  0x27   :  { %v42_v2 = vld [vmem:[#allocation2] sm:$0xff]  ;;  %v159_v3 = vpack.c.bf16 %v41_v1, %v40_v0  ;;  %v43_v4 = vld [vmem:[#allocation2 + $0x8] sm:$0xff]  ;;  %s133_s7 = sshll.u32 %s244_s6, 4  ;;  %s134_s7 = int_to_ptr.vmem [resolvable:$true] %s133_s7 }
  0x28   :  { %156 = vmatprep.mubr.msk.f32.mxu0 %vm44_vm0, %v42_v2  ;;  %s212_s1 = scalar_lea.vmem %s134_s7, 256  ;;  %p217_p3 = scmp.lt.s32.totalorder %s134_s7, %s134_s7 }
  0x29   :  { %160 = vmatprep.subr.bf16.mxu0 %v159_v3  ;;  %p213_p2 = scmp.ne.s32.totalorder %s134_s7, %s212_s1  ;;  %p218_p4 = scmp.lt.s32.totalorder %s212_s1, %s212_s1 }
  0x2a   :  { %162 = vmatpush3.bf16.msra.mxu0 %v159_v3 }
  0x2b   :  { %p219_p5 = por %p218_p4, %p217_p3 }
  0x2d   :  { %157 = vmatmul.mubr.msk.f32.vlgmr.msra.gmra.mrb[0].mxu0 %vm44_vm0, %v43_v4  ;;  %p220_p6 = pnand %p219_p5, %p213_p2 }
 0x100   :  { %v158_v5 = vpop.f32.mrb[0].mxu0 }
 0x101   :  { %127 = vst [vmem:[#allocation7 + $0x8] sm:$0xff] %v158_v5  ;;  %v117_v6 = vpop.f32.mrb[1].mxu0 }
 0x102   :  { %126 = vst [vmem:[#allocation7] sm:$0xff] %v117_v6 }
 0x103   :  { %223 = shalt.err (!%p220_p6)
}
 0x104   :  { %s224_s10 = scalar_lea.hbm %s307_s2, 256 }
 0x105   :  { %p225_p7 = scmp.ne.s32.totalorder %s307_s2, %s224_s10  ;;  %p228_p8 = scmp.lt.u32.totalorder %s224_s10, %s307_s2 }
 0x107   :  { %p230_p9 = pnand %p228_p8, %p225_p7 }
 0x109   :  { %233 = shalt.err (!%p230_p9)
}
 0x10a   :  { %139 = dma.vmem_to_hbm [thread:$0]  %s134_s7, 256, %s307_s2, [#allocation4], %s241_s19, %s241_s19, %s242_s20  }
 0x10b   :  { %238 = dma.done.wait [#allocation4], 256  }
 0x10c   :  { %239 = vsyncadd [#allocation4], 4294967040 }
 0x10d   :  { %143 = vsyncpa [#allocation3], 1 }
 0x10e   :  { %144 = vsyncpa [#allocation6], 1 }
 0x10f   :  { %145 = vsyncpa [#allocation4], 1 }

</bundles_post_ra>
